<compile_context>
chip_gen: v7x
topology: tpu7x:2x2x1
jax: 0.10.0
libtpu: 0.0.40
codegen_flags: <defaults>
</compile_context>

<pallas_src>
import jax
import jax.numpy as jnp
from jax.experimental import pallas as pl
from jax.experimental.pallas import tpu as pltpu

UNK_TOKEN_ID = 0  # llama_tokenizer.unk_token_id


def _choose_rows_per_step(n, hidden, itemsize, target=1024):
    """Rows per grid step: sublane-dense, VMEM-safe on v7x, divisor of n if possible."""
    pack = max(8, 32 // itemsize)                       # 8 f32 / 16 bf16 / 32 int8
    # Keep the two double-buffered output blocks under ~24 MiB so one tile
    # budget works on every generation (v7x: 64 MiB phys, 32 MiB default scoped).
    vmem_cap = (24 << 20) // (2 * hidden * itemsize)
    cap = max(pack, (min(vmem_cap, target) // pack) * pack)
    if n % pack == 0:
        divisors = [d for d in range(pack, min(cap, n) + 1, pack) if n % d == 0]
        # Prefer >= 2 grid steps (feeds both v7x TensorCores) when n allows it.
        multi_step = [d for d in divisors if n // d >= 2]
        if multi_step:
            return max(multi_step)
        if divisors:
            return max(divisors)
    # Rare fallback: n not a multiple of the sublane pack -> pad the tail.
    return max(pack, min(cap, ((n + pack - 1) // pack) * pack))


def _make_gather_kernel(n, n_pad, unk_id):
    padded = n_pad != n

    def kernel(ids_ref, item_ref, w_ref, b_ref, table_ref, o_ref, copy_sem):
        rows = o_ref.shape[0]
        base = pl.program_id(0) * rows

        # Fused embedding_proj: (8, input_dim) @ (input_dim, hidden) + b.
        # Tiny per-step MXU matmul; only row 0 is real (target_item_emb padded
        # to 8 sublanes in the wrapper), and it is consumed by at most one row.
        item_row = (
            jnp.dot(item_ref[...], w_ref[...], preferred_element_type=jnp.float32)
            + b_ref[...]
        ).astype(o_ref.dtype)[0:1]

        def preds(r):
            idx = base + r
            row_id = ids_ref[idx]
            is_unk = row_id == unk_id
            if padded:
                valid = idx < n
                return (row_id,
                        jnp.logical_and(valid, jnp.logical_not(is_unk)),
                        jnp.logical_and(valid, is_unk),
                        jnp.logical_not(valid))
            return row_id, jnp.logical_not(is_unk), is_unk, None

        # Issue: one row DMA per ordinary token, HBM table row -> output block
        # row (no landing buffer).  <unk> rows get the projected item embedding
        # via a vector store; padded tail rows (rare) are zero-filled.
        @pl.loop(0, rows)
        def _issue(r):
            row_id, do_gather, do_unk, do_pad = preds(r)

            @pl.when(do_gather)
            def _():
                pltpu.make_async_copy(
                    table_ref.at[pl.ds(row_id, 1)],
                    o_ref.at[pl.ds(r, 1)],
                    copy_sem,
                ).start()

            @pl.when(do_unk)
            def _():
                o_ref[pl.ds(r, 1), :] = item_row

            if do_pad is not None:
                @pl.when(do_pad)
                def _():
                    o_ref[pl.ds(r, 1), :] = jnp.zeros_like(item_row)

        # Drain: one matching wait per issued copy on the single shared DMA
        # semaphore; the descriptor is rebuilt identically (same src/dst).
        @pl.loop(0, rows)
        def _drain(r):
            row_id, do_gather, _, _ = preds(r)

            @pl.when(do_gather)
            def _():
                pltpu.make_async_copy(
                    table_ref.at[pl.ds(row_id, 1)],
                    o_ref.at[pl.ds(r, 1)],
                    copy_sem,
                ).wait()

    return kernel


def gather_embed_with_item(ids_flat, embed_table, target_item_emb, proj_w, proj_b,
                           *, target_rows=1024):
    """out[i] = embed_table[ids[i]]  (HBM row DMA), except ids[i]==<unk> rows,
    which get embedding_proj(target_item_emb) computed inside the kernel."""
    n = int(ids_flat.shape[0])
    _, hidden = embed_table.shape
    dtype = embed_table.dtype
    itemsize = jnp.dtype(dtype).itemsize
    input_dim = proj_w.shape[0]

    r = _choose_rows_per_step(n, hidden, itemsize, target_rows)
    n_pad = ((n + r - 1) // r) * r
    ids32 = ids_flat.astype(jnp.int32)
    ids_pad = ids32 if n_pad == n else jnp.zeros((n_pad,), jnp.int32).at[:n].set(ids32)

    # Pad the (1, input_dim) GAT item embedding to 8 sublanes for the MXU.
    item_pad = jnp.zeros((8, input_dim), proj_w.dtype).at[
        : target_item_emb.shape[0]].set(target_item_emb.astype(proj_w.dtype))
    bias2d = proj_b.reshape(1, hidden).astype(proj_w.dtype)

    grid_spec = pltpu.PrefetchScalarGridSpec(
        num_scalar_prefetch=1,
        grid=(n_pad // r,),
        in_specs=[
            pl.BlockSpec((8, input_dim), lambda i, ids: (0, 0)),       # item emb (resident)
            pl.BlockSpec((input_dim, hidden), lambda i, ids: (0, 0)),  # proj W   (resident)
            pl.BlockSpec((1, hidden), lambda i, ids: (0, 0)),          # proj b   (resident)
            pl.BlockSpec(memory_space=pl.ANY),                         # table stays in HBM
        ],
        out_specs=pl.BlockSpec((r, hidden), lambda i, ids: (i, 0)),
        scratch_shapes=[pltpu.SemaphoreType.DMA],                      # single shared DMA sem
    )

    out_bytes = 2 * r * hidden * itemsize                 # double-buffered output blocks
    const_bytes = 2 * (8 * input_dim + input_dim * hidden + hidden) * \
        jnp.dtype(proj_w.dtype).itemsize
    vmem_limit = int(max(32 << 20, out_bytes + const_bytes + (4 << 20)))

    out = pl.pallas_call(
        _make_gather_kernel(n, n_pad, UNK_TOKEN_ID),
        out_shape=jax.ShapeDtypeStruct((n_pad, hidden), dtype),
        grid_spec=grid_spec,
        compiler_params=pltpu.CompilerParams(
            dimension_semantics=("parallel",),            # rows independent (v7x: 2 TCs)
            vmem_limit_bytes=vmem_limit,
        ),
    )(ids_pad, item_pad, proj_w, bias2d, embed_table)
    return out if n_pad == n else out[:n]                 # normally no slice: r divides n


def llm4rec_forward(input_ids, attention_mask, labels,
                    target_item_emb, embed_table, proj_w, proj_b):
    bs, seq_len = input_ids.shape
    hidden = embed_table.shape[1]

    ids_flat = input_ids.reshape(-1).astype(jnp.int32)
    x_flat = gather_embed_with_item(ids_flat, embed_table,
                                    target_item_emb, proj_w, proj_b)
    x_emb = x_flat.reshape(bs, seq_len, hidden)

    assert attention_mask.shape[0] == bs and attention_mask.shape[1] == seq_len

    # TODO(synk): self.llama_model.forward(inputs_embeds=x_emb, attention_mask=...,
    # labels=...) — the pretrained LLaMA decoder + LM loss (and GAT.get_emb /
    # tokenizer / Collator) have no in-script Pallas equivalent; return the
    # assembled inputs_embeds instead.
    return x_emb


if __name__ == "__main__":
    bs, seq_len = 2, 8
    input_dim, hidden = 32, 128   # hidden stands in for llama hidden_size (5120)
    vocab = 64

    key = jax.random.PRNGKey(0)
    k_ids, k_item, k_tab, k_w, k_b = jax.random.split(key, 5)

    # Exactly one <unk> token across the batch (matches the assert in forward).
    input_ids = jax.random.randint(k_ids, (bs, seq_len), 1, vocab, dtype=jnp.int32)
    input_ids = input_ids.at[0, 3].set(UNK_TOKEN_ID)
    assert int(jnp.sum(input_ids == UNK_TOKEN_ID)) == 1

    attention_mask = jnp.ones((bs, seq_len), dtype=jnp.int32)
    labels = input_ids

    # Deterministic synthetic parameters / GAT output.
    target_item_emb = jax.random.normal(k_item, (1, input_dim), dtype=jnp.float32)
    embed_table = jax.random.normal(k_tab, (vocab, hidden), dtype=jnp.float32)
    proj_w = jax.random.normal(k_w, (input_dim, hidden), dtype=jnp.float32) * 0.02
    proj_b = jax.random.normal(k_b, (hidden,), dtype=jnp.float32) * 0.02

    x_emb = llm4rec_forward(input_ids, attention_mask, labels,
                            target_item_emb, embed_table, proj_w, proj_b)
    x_emb = jax.block_until_ready(x_emb)

    # Pure-JAX reference check.
    item_val = (target_item_emb @ proj_w + proj_b[None, :]).astype(embed_table.dtype)
    ids_flat = input_ids.reshape(-1)
    rows_ref = embed_table[ids_flat]
    ref = jnp.where((ids_flat == UNK_TOKEN_ID)[:, None], item_val, rows_ref)
    ref = ref.reshape(bs, seq_len, hidden)

    assert x_emb.shape == (bs, seq_len, hidden)
    assert x_emb.dtype == embed_table.dtype
    assert jnp.allclose(x_emb, ref, atol=1e-4, rtol=1e-4)

    print("KERNEL_OK")
</pallas_src>

<mosaic_0001>
module attributes {stable_mosaic.version = 11 : i64} {
  func.func @kernel(%arg0: i32, %arg1: memref<16xi32, #tpu.memory_space<smem>>, %arg2: memref<8x32xf32, #tpu.memory_space<vmem>>, %arg3: memref<32x128xf32, #tpu.memory_space<vmem>>, %arg4: memref<1x128xf32, #tpu.memory_space<vmem>>, %arg5: memref<64x128xf32, #tpu.memory_space<any>>, %arg6: memref<8x128xf32, #tpu.memory_space<vmem>>, %arg7: memref<!tpu.dma_semaphore, #tpu.memory_space<semaphore_mem>>) attributes {dimension_semantics = [#tpu.dimension_semantics<parallel>], iteration_bounds = array<i64: 2>, scalar_prefetch = 1 : i64, scratch_operands = 1 : i64, tpu.core_type = #tpu.core_type<tc>, window_params = [{pipeline_mode = #tpu.pipeline_mode<synchronous>, transform_indices = @transform_0, window_bounds = array<i64: 8, 32>}, {pipeline_mode = #tpu.pipeline_mode<synchronous>, transform_indices = @transform_1, window_bounds = array<i64: 32, 128>}, {pipeline_mode = #tpu.pipeline_mode<synchronous>, transform_indices = @transform_2, window_bounds = array<i64: 1, 128>}, {}, {transform_indices = @transform_4, window_bounds = array<i64: 8, 128>}]} {
    %c8_i32 = arith.constant 8 : i32
    %0 = arith.muli %arg0, %c8_i32 : i32
    %c0 = arith.constant 0 : index
    %c0_0 = arith.constant 0 : index
    %1 = vector.load %arg2[%c0, %c0_0] : memref<8x32xf32, #tpu.memory_space<vmem>>, vector<8x32xf32>
    %c0_1 = arith.constant 0 : index
    %c0_2 = arith.constant 0 : index
    %2 = vector.load %arg3[%c0_1, %c0_2] : memref<32x128xf32, #tpu.memory_space<vmem>>, vector<32x128xf32>
    %cst = arith.constant dense<0.000000e+00> : vector<8x128xf32>
    %3 = tpu.matmul %1, %2, %cst {dimension_numbers = #tpu.dot_dimension_numbers<[1], [0], [0], [1], [0, 0, 1, 1], [], []>} : vector<8x32xf32>, vector<32x128xf32>, vector<8x128xf32> -> vector<8x128xf32>
    %c0_3 = arith.constant 0 : index
    %c0_4 = arith.constant 0 : index
    %4 = vector.load %arg4[%c0_3, %c0_4] : memref<1x128xf32, #tpu.memory_space<vmem>>, vector<1x128xf32>
    %5 = vector.broadcast %4 : vector<1x128xf32> to vector<8x128xf32>
    %6 = arith.addf %3, %5 : vector<8x128xf32>
    %7 = vector.extract_strided_slice %6 {offsets = [0, 0], sizes = [1, 128], strides = [1, 1]} : vector<8x128xf32> to vector<1x128xf32>
    %c0_i32 = arith.constant 0 : i32
    %c8_i32_5 = arith.constant 8 : i32
    %8 = arith.addi %c0_i32, %c8_i32_5 : i32
    %c1_i32 = arith.constant 1 : i32
    scf.for %arg8 = %c0_i32 to %8 step %c1_i32  : i32 {
      %c1_i32_11 = arith.constant 1 : i32
      %10 = arith.muli %arg8, %c1_i32_11 : i32
      %c0_i32_12 = arith.constant 0 : i32
      %11 = arith.addi %c0_i32_12, %10 : i32
      %12 = arith.addi %0, %11 : i32
      %13 = arith.index_cast %12 : i32 to index
      %14 = memref.load %arg1[%13] : memref<16xi32, #tpu.memory_space<smem>>
      %c0_i32_13 = arith.constant 0 : i32
      %15 = arith.cmpi eq, %14, %c0_i32_13 : i32
      %true = arith.constant true
      %16 = arith.xori %15, %true : i1
      %17 = arith.extui %16 : i1 to i32
      %c0_i32_14 = arith.constant 0 : i32
      %18 = arith.cmpi ne, %17, %c0_i32_14 : i32
      scf.if %18 {
        %c0_i32_16 = arith.constant 0 : i32
        %21 = tpu.memref_slice %arg5[%14, %c0_i32_16] : memref<64x128xf32, #tpu.memory_space<any>> -> memref<1x128xf32, #tpu.memory_space<any>>
        %c0_i32_17 = arith.constant 0 : i32
        %22 = tpu.memref_slice %arg6[%11, %c0_i32_17] : memref<8x128xf32, #tpu.memory_space<vmem>> -> memref<1x128xf32, #tpu.memory_space<vmem>>
        tpu.enqueue_dma source(%21 : memref<1x128xf32, #tpu.memory_space<any>>) target(%22 : memref<1x128xf32, #tpu.memory_space<vmem>>) target_semaphore(%arg7 : memref<!tpu.dma_semaphore, #tpu.memory_space<semaphore_mem>>)
      } else {
      }
      %19 = arith.extui %15 : i1 to i32
      %c0_i32_15 = arith.constant 0 : i32
      %20 = arith.cmpi ne, %19, %c0_i32_15 : i32
      scf.if %20 {
        %21 = arith.index_cast %11 : i32 to index
        %c0_16 = arith.constant 0 : index
        %22 = vector.load %arg6[%21, %c0_16] : memref<8x128xf32, #tpu.memory_space<vmem>>, vector<1x128xf32>
        tpu.vector_store %arg6[%21, %c0_16], %7 {strides = array<i32>} : memref<8x128xf32, #tpu.memory_space<vmem>>, vector<1x128xf32>,
      } else {
      }
    }
    %c8_i32_6 = arith.constant 8 : i32
    %c0_i32_7 = arith.constant 0 : i32
    %c8_i32_8 = arith.constant 8 : i32
    %9 = arith.addi %c0_i32_7, %c8_i32_8 : i32
    %c1_i32_9 = arith.constant 1 : i32
    scf.for %arg8 = %c0_i32_7 to %9 step %c1_i32_9  : i32 {
      %c1_i32_11 = arith.constant 1 : i32
      %10 = arith.muli %arg8, %c1_i32_11 : i32
      %c0_i32_12 = arith.constant 0 : i32
      %11 = arith.addi %c0_i32_12, %10 : i32
      %12 = arith.addi %0, %11 : i32
      %13 = arith.index_cast %12 : i32 to index
      %14 = memref.load %arg1[%13] : memref<16xi32, #tpu.memory_space<smem>>
      %c0_i32_13 = arith.constant 0 : i32
      %15 = arith.cmpi eq, %14, %c0_i32_13 : i32
      %true = arith.constant true
      %16 = arith.xori %15, %true : i1
      %17 = arith.extui %16 : i1 to i32
      %c0_i32_14 = arith.constant 0 : i32
      %18 = arith.cmpi ne, %17, %c0_i32_14 : i32
      scf.if %18 {
        %c0_i32_15 = arith.constant 0 : i32
        %19 = tpu.memref_slice %arg5[%14, %c0_i32_15] : memref<64x128xf32, #tpu.memory_space<any>> -> memref<1x128xf32, #tpu.memory_space<any>>
        %c0_i32_16 = arith.constant 0 : i32
        %20 = tpu.memref_slice %arg6[%11, %c0_i32_16] : memref<8x128xf32, #tpu.memory_space<vmem>> -> memref<1x128xf32, #tpu.memory_space<vmem>>
        tpu.wait_dma2 semaphore(%arg7 : memref<!tpu.dma_semaphore, #tpu.memory_space<semaphore_mem>>) src(%19 : memref<1x128xf32, #tpu.memory_space<any>>) dst(%20 : memref<1x128xf32, #tpu.memory_space<vmem>>)
      } else {
      }
    }
    %c8_i32_10 = arith.constant 8 : i32
    return
  }
  func.func @transform_0(%arg0: i32, %arg1: memref<16xi32, #tpu.memory_space<smem>>) -> (i32, i32) {
    %c0_i32 = arith.constant 0 : i32
    %c0_i32_0 = arith.constant 0 : i32
    %c0_i32_1 = arith.constant 0 : i32
    return %c0_i32, %c0_i32_0 : i32, i32
  }
  func.func @transform_1(%arg0: i32, %arg1: memref<16xi32, #tpu.memory_space<smem>>) -> (i32, i32) {
    %c0_i32 = arith.constant 0 : i32
    %c0_i32_0 = arith.constant 0 : i32
    %c0_i32_1 = arith.constant 0 : i32
    return %c0_i32, %c0_i32_0 : i32, i32
  }
  func.func @transform_2(%arg0: i32, %arg1: memref<16xi32, #tpu.memory_space<smem>>) -> (i32, i32) {
    %c0_i32 = arith.constant 0 : i32
    %c0_i32_0 = arith.constant 0 : i32
    %c0_i32_1 = arith.constant 0 : i32
    return %c0_i32, %c0_i32_0 : i32, i32
  }
  func.func @transform_4(%arg0: i32, %arg1: memref<16xi32, #tpu.memory_space<smem>>) -> (i32, i32) {
    %c0_i32 = arith.constant 0 : i32
    %c0_i32_0 = arith.constant 0 : i32
    return %arg0, %c0_i32 : i32, i32
  }
}

</mosaic_0001>

<bundles_post_ra>
// kernel: tpu_custom_call.1
= control target key start
LH: loop header
LB: loop body
LE: loop exit
PB: predicated region body
PF: predicated region fallthrough
CT: control target
= control target key end

     0   :  { %s1012_s0 = inlined_call_operand.hbm [shape: s32[16], index: 0, kind: input, shape index: {}]   ;;  %s1013_s1 = inlined_call_operand.hbm [shape: f32[8,32], index: 1, kind: input, shape index: {}]   ;;  %s1014_s2 = inlined_call_operand.hbm [shape: f32[32,128], index: 2, kind: input, shape index: {}]   ;;  %s1015_s3 = inlined_call_operand.vmem [shape: f32[1,128], index: 3, kind: input, shape index: {}]   ;;  %s1016_s4 = inlined_call_operand.hbm [shape: f32[64,128], index: 4, kind: input, shape index: {}]   ;;  %s1017_s5 = inlined_call_operand.hbm [shape: f32[16,128], index: 5, kind: output, shape index: {}]  }
   0x1   :  { %s550_s20 = scalar_lea.hbm %s1012_s0, 16 }
   0x2   :  { %p551_p0 = scmp.ne.s32.totalorder %s1012_s0, %s550_s20  ;;  %p554_p1 = scmp.lt.u32.totalorder %s550_s20, %s1012_s0 }
   0x4   :  { %p556_p2 = pnand %p554_p1, %p551_p0 }
   0x6   :  { %559 = shalt.err (!%p556_p2)  }
   0x7   :  { %s738_s25 = smov [#allocation4]  }
   0x8   :  { %11 = dma.hbm_to_smem %s1012_s0, 16, %s738_s25, [#allocation3] }
   0x9   :  { %696 = dma.done.wait [#allocation3], 16 }
   0xa   :  { %697 = vsyncadd [#allocation3], 4294967280 }
   0xb   :  { %13 = sfence }
   0xc   :  { %14 = vsyncpa [#allocation6], 0 }
   0xd   :  { %15 = vsyncpa [#allocation9], 0 }
   0xe   :  { %16 = vsyncpa [#allocation7], 0 }
   0xf   :  { %18 = vsyncpa [#allocation7 + $0x1], 0  ;;  %s789_s28 = smov 0   ;;  %s791_s29 = smov 0  }
  0x10   :  { %s793_s30 = smov 0   ;;  %s795_s6 = smov 0  }
  0x11 LB: > { %s810_s0 = sadd.s32 4294967295, %s728_s6   ;;  %s420_s7 = sadd.s32 4294967294, %s728_s6   ;;  %s728_s6 = sphi %s795_s6, %s1037_s6   ;;  %s724_s30 = sphi %s793_s30, %s1036_s30   ;;  %s720_s29 = sphi %s791_s29, %s1035_s29   ;;  %s716_s28 = sphi %s789_s28, %s1034_s28  }
  0x12   : > { %s814_s8 = sadd.s32 1, %s728_s6   ;;  %s94_s9 = sadd.s32 1, %s724_s30 }
  0x13   : > { %s91_s10 = ssub.s32 %s728_s6, %s814_s8  ;;  %p104_p3 = scmp.ne.s32.totalorder %s724_s30, %s720_s29 }
  0x14   : > { %p92_p4 = scmp.eq.s32.totalorder %s91_s10, 0  ;;  %p105_p5 = scmp.eq.s32.totalorder %s810_s0, 1 }
  0x15   : > { %p110_p6 = scmp.ne.s32.totalorder %s720_s29, %s716_s28  ;;  %p111_p7 = scmp.eq.s32.totalorder %s420_s7, 1 }
  0x16   : > { %s825_s11 = scalar_select %p92_p4, %s724_s30, %s94_s9  }
  0x17   : > { %p827_p8 = por %p105_p5, %p104_p3  ;;  %p831_p9 = por %p111_p7, %p110_p6 }
  0x18   : > { %p421_p10 = scmp.ge.s32.totalorder %s728_s6, 1  ;;  %p118_p11 = scmp.lt.s32.totalorder %s728_s6, 3 }
  0x19   : > { %s1022_s12 = scalar_select %p827_p8, 1, 0 }
  0x1a   : > { %s1023_s13 = scalar_select %p831_p9, 1, 0 }
  0x1b   : > { %p1018_p12 = scmp.eq.s32.totalorder %s810_s0, 0  ;;  %p838_p13 = pnand %p421_p10, %p118_p11 }
  0x1c   : > { %s739_s15 = smov [#allocation5]   ;;  %s740_s17 = smov [#allocation8]  }
  0x1d   : > { %s1024_s14 = scalar_select %p838_p13, 1, 0 }
  0x1e   : > { %s131_s16 = sshll.u32 %s739_s15, 4  ;;  %p476_p0 = pneg %p838_p13  ;;  %s132_s16 = int_to_ptr.vmem [resolvable:$true] %s131_s16 }
  0x1f   : > { %s141_s18 = sshll.u32 %s740_s17, 4  ;;  %s560_s22 = scalar_lea.hbm %s1013_s1, 128  ;;  %s850_s18 = int_to_ptr.vmem [resolvable:$true] %s141_s18 }
  0x20   : > { %p846_p1 = pnand %p1018_p12, %p476_p0  ;;  %p561_p2 = scmp.ne.s32.totalorder %s1013_s1, %s560_s22 }
  0x21   : > { %p567_p6 = scmp.lt.u32.totalorder %s560_s22, %s1013_s1 }
  0x22   : > { %p562_p3 = pneg %p846_p1 }
  0x24   : > { %p563_p4 = pnand %p562_p3, %p561_p2 }
  0x26   : > { %p564_p5 = pneg %p563_p4 }
  0x28   : > { %p569_p7 = pnand %p567_p6, %p564_p5 }
  0x2a   : > { %572 = shalt.err (!%p569_p7)
}
  0x2b   : > { %s573_s27 = scalar_lea.vmem %s132_s16, 128  ;;  %p581_p12 = scmp.lt.s32.totalorder %s132_s16, %s132_s16 }
  0x2c   : > { %p574_p10 = scmp.ne.s32.totalorder %s132_s16, %s573_s27  ;;  %p582_p9 = scmp.lt.s32.totalorder %s573_s27, %s573_s27 }
  0x2e   : > { %p576_p11 = pnand %p574_p10, %p562_p3  ;;  %p583_p8 = por %p582_p9, %p581_p12 }
  0x30   : > { %p577_p0 = pneg %p576_p11 }
  0x32   : > { %p584_p13 = pnand %p583_p8, %p577_p0 }
  0x34   : > { %587 = shalt.err (!%p584_p13)
}
  0x35   : > { %479 = dma.hbm_to_vmem [thread:$0]  (!%p846_p1), %s1013_s1, 128, %s132_s16, [#allocation6]  }
  0x36   : > { %s588_s17 = scalar_lea.hbm %s1014_s2, 512 }
  0x37   : > { %p589_p2 = scmp.ne.s32.totalorder %s1014_s2, %s588_s17  ;;  %p595_p12 = scmp.lt.u32.totalorder %s588_s17, %s1014_s2 }
  0x39   : > { %p591_p9 = pnand %p589_p2, %p562_p3 }
  0x3b   : > { %p592_p8 = pneg %p591_p9 }
  0x3d   : > { %p597_p13 = pnand %p595_p12, %p592_p8 }
  0x3f   : > { %600 = shalt.err (!%p597_p13)
}
  0x40   : > { %s601_s16 = scalar_lea.vmem %s850_s18, 512  ;;  %p609_p7 = scmp.lt.s32.totalorder %s850_s18, %s850_s18 }
  0x41   : > { %p602_p4 = scmp.ne.s32.totalorder %s850_s18, %s601_s16  ;;  %p610_p10 = scmp.lt.s32.totalorder %s601_s16, %s601_s16 }
  0x43   : > { %p604_p5 = pnand %p602_p4, %p562_p3  ;;  %p611_p11 = por %p610_p10, %p609_p7 }
  0x45   : > { %p605_p6 = pneg %p604_p5 }
  0x47   : > { %p612_p0 = pnand %p611_p11, %p605_p6 }
  0x49   : > { %615 = shalt.err (!%p612_p0)
}
  0x4a   : > { %s741_s24 = smov 128   ;;  %s742_s25 = smov 8  }
  0x4b   : > { %482 = dma.hbm_to_vmem [thread:$0]  (!%p846_p1), %s1014_s2, 512, %s850_s18, [#allocation9], %s741_s24, %s741_s24, %s742_s25  }
  0x4c   : > { %p1026_p2 = scmp.ne.s32.totalorder %s1024_s14, 0 }
  0x4d   : > { %p1027_p3 = scmp.eq.s32.totalorder (!%p1026_p2), %s810_s0, 0 }
  0x4e   : > { %160 = sbr.rel (%p1026_p2) target bundleno = 397 (0x18d), region = 32 }
  0x55   : > { %699 = dma.done.wait (%p1027_p3), [#allocation6], 128   ;;  %p1028_p9 = pmov %p1027_p3 }
  0x56   : > { %p1029_p8 = pmov %p1027_p3 }
  0x57   : > { %701 = vsyncadd (%p1028_p9), [#allocation6], 4294967168 }
  0x58   : > { %703 = dma.done.wait (%p1029_p8), [#allocation9], 512   ;;  %p1030_p12 = pmov %p1027_p3 }
  0x59   : > { %s1021_s19 = sand.u32 1, %s720_s29   ;;  %s428_s18 = sshll.u32 %s810_s0, 3  ;;  %v743_v0 = vmov 0.0|0.0   ;;  %vm744_vm0 = vmmov 0   ;;  %v745_v1 = vmov 0.0   ;;  %v185_v2 = vld [vmem:[#allocation8] sm:$0xff] }
  0x5a   : > { %705 = vsyncadd (%p1030_p12), [#allocation9], 4294966784  ;;  %s913_s14 = sshll.u32 %s1021_s19, 3  ;;  %456 = vmatprep.subr.bf16.mxu0 %v743_v0  ;;  %453 = vmatprep.mubr.msk.f32.mxu0 %vm744_vm0, %v745_v1  ;;  %v186_v3 = vld [vmem:[#allocation8 + $0x8] sm:$0xff]  ;;  %v187_v4 = vld [vmem:[#allocation8 + $0x10] sm:$0xff]  ;;  %vm196_vm1 = vcmask 261120  }
  0x5b   : > { %v457_v5 = vpack.c.bf16 %v186_v3, %v185_v2  ;;  %v188_v6 = vld [vmem:[#allocation8 + $0x18] sm:$0xff]  ;;  %s182_s10 = scalar_lea.vmem [#allocation10], %s913_s14  ;;  %s919_s15 = smov 0  }
  0x5c   : > { %v460_v7 = vpack.c.bf16 %v188_v6, %v187_v4  ;;  %v184_v8 = vld [vmem:[#allocation5] sm:$0xff] }
  0x5d   : > { %458 = vmatpush3.bf16.msra.mxu0 %v457_v5  ;;  %v429_v9 = vld [vmem:[%s1015_s3] ss:$0 sm:$0xff] }
  0x5e   : > { %459 = vmatprep.subr.bf16.mxu0 %v743_v0 }
  0x61   : > { %461 = vmatpush3.bf16.msra.mxu0 %v460_v7 }
  0x64   : > { %454 = vmatmul.mubr.msk.f32.vlgmr.msra.gmra.mrb[0].mxu0 %vm196_vm1, %v184_v8 }
 0x137   : > { %v266_v10 = vpop.f32.mrb[0].mxu0 }
 0x138   : > { %v267_v11 = vadd.f32 %v429_v9, %v266_v10  ;;  %v455_v12 = vpop.f32.mrb[1].mxu0 }
 0x139 LB: >> { %s276_s17 = sadd.s32 %s732_s15, %s428_s18  ;;  %s930_s20 = scalar_lea.vmem %s182_s10, %s732_s15 [#allocation10]  ;;  %s732_s15 = sphi %s919_s15, %s275_s15  }
 0x13a   : >> { %s932_s21 = sld [smem:[#allocation4 + %s276_s17]]  ;;  %s293_s22 = sshll.u32 %s930_s20, 4  ;;  %s935_s22 = int_to_ptr.vmem [resolvable:$true] %s293_s22 }
 0x13b   : >> { %s620_s9 = scalar_lea.hbm %s1016_s4, 1024 }
 0x140   : >> { %p491_p1 = scmp.ne.s32.totalorder %s932_s21, 0  ;;  %s432_s23 = sshll.u32 %s932_s21, 4 }
 0x141   : >> { %s284_s25 = scalar_lea.hbm %s1016_s4, %s432_s23 }
 0x142   : >> { %s616_s26 = scalar_lea.hbm %s284_s25, 16  ;;  %p621_p6 = scmp.lt.u32.totalorder %s284_s25, %s1016_s4 }
 0x143   : >> { %p617_p13 = scmp.ne.s32.totalorder %s284_s25, %s616_s26  ;;  %p622_p7 = scmp.lt.u32.totalorder %s620_s9, %s616_s26 }
 0x144   : >> { %p624_p11 = scmp.lt.u32.totalorder %s616_s26, %s284_s25 }
 0x145   : >> { %p618_p4 = pnand %p617_p13, %p491_p1  ;;  %p623_p10 = por %p622_p7, %p621_p6 }
 0x147   : >> { %p619_p5 = pneg %p618_p4  ;;  %p625_p0 = por %p624_p11, %p623_p10 }
 0x149   : >> { %p626_p2 = pnand %p625_p0, %p619_p5 }
 0x14b   : >> { %629 = shalt.err (!%p626_p2)  }
 0x14c   : >> { %s630_s23 = scalar_lea.vmem %s935_s22, 16  ;;  %s746_s16 = smov [#allocation10]  }
 0x14d   : >> { %p631_p3 = scmp.ne.s32.totalorder %s935_s22, %s630_s23  ;;  %s634_s24 = sshll.u32 %s746_s16, 4  ;;  %s954_s24 = int_to_ptr.vmem [resolvable:$false] %s634_s24 }
 0x14e   : >> { %s636_s19 = scalar_lea.vmem %s954_s24, 256  ;;  %p637_p12 = scmp.lt.s32.totalorder %s935_s22, %s954_s24 }
 0x14f   : >> { %p632_p9 = pnand %p631_p3, %p491_p1  ;;  %p638_p13 = scmp.lt.s32.totalorder %s636_s19, %s630_s23 }
 0x151   : >> { %p633_p8 = pneg %p632_p9  ;;  %p639_p4 = por %p638_p13, %p637_p12 }
 0x153   : >> { %p640_p5 = pnand %p639_p4, %p633_p8 }
 0x155   : >> { %643 = shalt.err (!%p640_p5)  }
 0x156   : >> { %471 = dma.hbm_to_vmem [thread:$0]  (%p491_p1), %s284_s25, 16, %s935_s22, [#allocation2] }
 0x157   : >> { %299 = sbr.rel (%p491_p1) target bundleno = 350 (0x15e), region = 59  ;;  %301 = vst [vmem:[%s930_s20] sm:$0x1] (!%p491_p1), %v267_v11 }
 0x15e PF: >> { %s275_s15 = sadd.s32 1, %s732_s15  }
 0x15f   : >> { %p272_p6 = scmp.ge.s32.totalorder %s275_s15, 8  }
 0x160   : > { %s734_s26 = smov (%p272_p6), 0  }
 0x161   : > { %274 = sbr.rel (!%p272_p6) target bundleno = 313 (0x139), region = 106 }
 0x168 LB: >> { %s308_s27 = sadd.s32 %s736_s26, %s428_s18  ;;  %s736_s26 = sphi %s734_s26, %s307_s26  }
 0x169   : >> { %s309_s22 = sld [smem:[#allocation4 + %s308_s27]] }
 0x16f   : >> { %p492_p7 = scmp.ne.s32.totalorder %s309_s22, 0 }
 0x171   : >> { %707 = dma.done.wait (%p492_p7), [#allocation2], 16 }
 0x172   : >> { %709 = vsyncadd (%p492_p7), [#allocation2], 4294967280  ;;  %s307_s26 = sadd.s32 1, %s736_s26  }
 0x173   : >> { %p304_p1 = scmp.ge.s32.totalorder %s307_s26, 8  }
 0x174   : > { %s436_s15 = sshll.u32 (%p304_p1), %s810_s0, 7  ;;  %s331_s7 = sshll.u32 (%p304_p1), %s182_s10, 4  ;;  %s332_s7 = int_to_ptr.vmem [resolvable:$true] %s331_s7 }
 0x175   : > { %306 = sbr.rel (!%p304_p1) target bundleno = 360 (0x168), region = 117  ;;  %s329_s25 = scalar_lea.hbm (%p304_p1), %s1017_s5, %s436_s15 }
 0x176   : > { %s1031_s9 = sand.u32 (%p304_p1), 1, %s720_s29   ;;  %s644_s23 = scalar_lea.vmem (%p304_p1), %s332_s7, 128 }
 0x177   : > { %s318_s17 = scalar_lea.sflag (%p304_p1), [#allocation7], %s1031_s9  ;;  %p645_p10 = scmp.ne.s32.totalorder (%p304_p1), %s332_s7, %s644_s23 }
 0x178   : > { %p1032_p11 = scmp.ne.s32.totalorder (%p304_p1), %s1022_s12, 0  ;;  %p651_p3 = scmp.lt.s32.totalorder (%p304_p1), %s332_s7, %s954_s24 }
 0x179   : > { %p652_p9 = scmp.lt.s32.totalorder (%p304_p1), %s636_s19, %s644_s23 }
 0x17a   : > { %p646_p0 = pnand (%p304_p1), %p645_p10, %p1032_p11 }
 0x17b   : > { %p653_p8 = por (%p304_p1), %p652_p9, %p651_p3 }
 0x17c   : > { %p647_p2 = pneg %p646_p0 }
 0x17e   : > { %p654_p12 = pnand %p653_p8, %p647_p2 }
 0x180   : > { %657 = shalt.err (!%p654_p12)
}
 0x181   : > { %s658_s0 = scalar_lea.hbm %s329_s25, 128  ;;  %s662_s10 = scalar_lea.hbm %s1017_s5, 256 }
 0x182   : > { %p659_p13 = scmp.ne.s32.totalorder %s329_s25, %s658_s0  ;;  %p663_p6 = scmp.lt.u32.totalorder %s329_s25, %s1017_s5 }
 0x183   : > { %p664_p7 = scmp.lt.u32.totalorder %s662_s10, %s658_s0  ;;  %p666_p10 = scmp.lt.u32.totalorder %s658_s0, %s329_s25 }
 0x184   : > { %p660_p4 = pnand %p659_p13, %p1032_p11 }
 0x185   : > { %p665_p1 = por %p664_p7, %p663_p6 }
 0x186   : > { %p661_p5 = pneg %p660_p4 }
 0x187   : > { %p667_p0 = por %p666_p10, %p665_p1 }
 0x189   : > { %p668_p2 = pnand %p667_p0, %p661_p5 }
 0x18b   : > { %671 = shalt.err (!%p668_p2)
}
 0x18c   : > { %474 = dma.vmem_to_hbm [thread:$0]  (%p1032_p11), %s332_s7, 128, %s329_s25, %s318_s17  }
 0x18d PF: > { %p493_p3 = scmp.ge.s32.totalorder %s728_s6, 2  ;;  %s343_s24 = sand.u32 1, %s716_s28  }
 0x18e   : > { %p1033_p9 = scmp.ne.s32.totalorder %s1023_s13, 0  ;;  %s344_s19 = scalar_lea.sflag [#allocation7], %s343_s24 }
 0x190   : > { %p484_p8 = pnand %p493_p3, %p1033_p9 }
 0x192   : > { %711 = dma.done.wait (!%p484_p8), %s344_s19, 128  }
 0x193   : > { %713 = vsyncadd (!%p484_p8), %s344_s19, 4294967168  ;;  %p21_p12 = scmp.ge.s32.totalorder %s814_s8, 4   ;;  %s1034_s28 = smov %s720_s29 }
 0x194   : > { %s1035_s29 = smov %s724_s30  ;;  %s1036_s30 = smov %s825_s11 }
 0x195   : > { %s1037_s6 = smov %s814_s8  ;;  %23 = sbr.rel (!%p21_p12) target bundleno = 17 (0x11), region = 128 }
 0x19c   :  { %349 = vsyncpa [#allocation6], 1 }
 0x19d   :  { %351 = vsyncpa [#allocation6 + $0x1], 1 }
 0x19e   :  { %352 = vsyncpa [#allocation9], 1 }
 0x19f   :  { %353 = vsyncpa [#allocation7], 1 }
 0x1a0   :  { %355 = vsyncpa [#allocation7 + $0x1], 1 }
 0x1a1   :  { %356 = vsyncmov [#allocation2] }
 0x1a4   :  { %s357_s6 = vpop.sfrf %356 }
 0x1a5   :  { %p439_p11 = scmp.ne.s32.totalorder %s357_s6, 0 }
 0x1a7   :  { %361 = shalt.err (%p439_p11)  }

</bundles_post_ra>
